<compile_context>
chip_gen: v7x
topology: tpu7x:2x2x1
jax: 0.10.0
libtpu: 0.0.40
codegen_flags: <defaults>
</compile_context>

<pallas_src>
import jax
import jax.numpy as jnp
from jax.experimental import pallas as pl
from jax.experimental.pallas import tpu as pltpu


def _rope_kernel(x_ref, cos_ref, sin_ref, o_ref):
    # x_ref / o_ref:    (G, TS, W)  -- G heads x TS positions x head width
    # cos_ref / sin_ref: (TS, W)    -- f32 tables, broadcast over the head group
    x = x_ref[...]
    half = x.shape[-1] // 2
    # rotate-half (PyTorch `_rotate`): concat([-x2, x1]) along the last dim.
    rot = jnp.concatenate([-x[..., half:], x[..., :half]], axis=-1)
    # f32 tables promote the math to f32; cast back to the output dtype.
    o_ref[...] = (cos_ref[...] * x + sin_ref[...] * rot).astype(o_ref.dtype)


def make_rotary_tables(width: int, seq_len: int, base: int = 10000):
    """Replicates RotaryEmbeddings.__init__ / _create_rotary_embed (f32 tables)."""
    theta = jnp.power(
        float(base), -jnp.arange(0, width, 2, dtype=jnp.float32) / width
    )                                                           # (width/2,)
    position = jnp.arange(seq_len, dtype=jnp.float32)[:, None]  # (S, 1)
    m_theta = position * theta[None, :]                         # (S, width/2)
    m_theta = jnp.concatenate([m_theta, m_theta], axis=-1)      # (S, width)
    return jnp.cos(m_theta), jnp.sin(m_theta)


def _packed_sublane(itemsize: int) -> int:
    # Packed-sublane row granularity: 8 rows for f32, 16 for bf16, 32 for int8/fp8.
    return 8 * max(1, 4 // itemsize)


def _choose_tiles(n_heads_total: int, s: int, w: int, itemsize: int,
                  budget: int = 4 << 20):
    """Pick (head_group, seq_tile) so one x tile is <= ~`budget` bytes."""
    sub = _packed_sublane(itemsize)
    row_bytes = max(w * itemsize, 1)
    max_ts = max(sub, (budget // row_bytes) // sub * sub)
    # Full seq dim when it fits (always layout-legal, no padding); otherwise a
    # sublane-aligned tile with the ragged remainder handled by a cdiv grid.
    ts = s if s <= max_ts else max_ts
    # Largest divisor of the flattened head count that keeps the tile in budget.
    g_cap = max(1, budget // max(ts * row_bytes, 1))
    g = 1
    for cand in range(1, n_heads_total + 1):
        if n_heads_total % cand == 0 and cand <= g_cap:
            g = cand
    return g, ts


def rotary_embeddings(x, cos, sin):
    """Apply rotary embeddings (positions assumed to be [0, seq_len)).

    x:   (batch, n_heads, seq_len, width)
    cos: (>=seq_len, width)  precomputed cos table
    sin: (>=seq_len, width)  precomputed sin table
    """
    b, h, s, w = x.shape
    assert w % 2 == 0, "width must be even"
    assert cos.shape[0] >= s and sin.shape[0] >= s, (
        f"rotary tables cover {cos.shape[0]} positions, need {s}")
    assert cos.shape[1] == w and sin.shape[1] == w, "table width mismatch"

    # Keep tables in f32: their traffic is 1/(b*h) of x's, and f32 math avoids
    # extra rounding for bf16 inputs.
    cos_s = cos[:s, :].astype(jnp.float32)
    sin_s = sin[:s, :].astype(jnp.float32)

    n = b * h
    x_flat = x.reshape(n, s, w)
    itemsize = jnp.dtype(x.dtype).itemsize

    g, ts = _choose_tiles(n, s, w, itemsize)
    n_seq = pl.cdiv(s, ts)      # robust to non-dividing sequence lengths
    n_grp = n // g

    # Explicit scoped-VMEM limit: double-buffered x in + out + the two tables,
    # with margin.  Floor 32 MiB (covers compiler temporaries), cap 48 MiB
    # (safe below v7x's 64 MiB physical VMEM).
    x_tile_bytes = g * ts * w * itemsize
    tab_tile_bytes = ts * w * 4
    vmem_needed = 2 * 2 * x_tile_bytes + 2 * 2 * tab_tile_bytes
    vmem_limit = int(min(max(2 * vmem_needed, 32 << 20), 48 << 20))

    flops = 3 * x.size                                      # 2 mul + 1 add / elem
    bytes_accessed = 2 * x.size * itemsize + 2 * s * w * 4  # x in+out, tables

    out_flat = pl.pallas_call(
        _rope_kernel,
        out_shape=jax.ShapeDtypeStruct((n, s, w), x.dtype),
        grid_spec=pltpu.PrefetchScalarGridSpec(
            num_scalar_prefetch=0,
            # Seq tiles outermost: cos/sin block index is constant across the
            # inner head-group loop, so their tiles are DMA'd once per seq tile.
            grid=(n_seq, n_grp),
            in_specs=[
                pl.BlockSpec((g, ts, w), lambda si, gi: (gi, si, 0)),
                pl.BlockSpec((ts, w), lambda si, gi: (si, 0)),
                pl.BlockSpec((ts, w), lambda si, gi: (si, 0)),
            ],
            out_specs=pl.BlockSpec((g, ts, w), lambda si, gi: (gi, si, 0)),
        ),
        compiler_params=pltpu.CompilerParams(
            dimension_semantics=("parallel", "parallel"),
            vmem_limit_bytes=vmem_limit),
        cost_estimate=pl.CostEstimate(
            flops=flops, transcendentals=0, bytes_accessed=bytes_accessed),
    )(x_flat, cos_s, sin_s)

    return out_flat.reshape(b, h, s, w)


def rotary_embeddings_ref(x, cos, sin):
    """Pure-JAX reference mirroring the PyTorch forward (positions=None)."""
    b, h, s, w = x.shape
    rot_cos = cos[:s, :].reshape(1, 1, s, w)
    rot_sin = sin[:s, :].reshape(1, 1, s, w)
    half = w // 2
    rot = jnp.concatenate([-x[..., half:], x[..., :half]], axis=-1)
    return (rot_cos * x + rot_sin * rot).astype(x.dtype)


if __name__ == "__main__":
    key = jax.random.PRNGKey(0)

    # --- Test 1: module-consistent small shape (batch, n_heads, seq, width) ---
    batch, heads, seq, width = 2, 4, 8, 32
    x = jax.random.normal(key, (batch, heads, seq, width), dtype=jnp.float32)
    cos, sin = make_rotary_tables(width=width, seq_len=seq, base=10000)

    out = jax.block_until_ready(rotary_embeddings(x, cos, sin))
    expected = rotary_embeddings_ref(x, cos, sin)
    assert out.shape == (batch, heads, seq, width)
    assert jnp.allclose(out, expected, atol=1e-5, rtol=1e-5), "mismatch (small)"

    # --- Test 2: longer sequence to exercise the bigger-tile path ---
    b2, h2, s2, w2 = 1, 2, 2048, 64
    x2 = jax.random.normal(jax.random.PRNGKey(0), (b2, h2, s2, w2),
                           dtype=jnp.float32)
    cos2, sin2 = make_rotary_tables(width=w2, seq_len=s2, base=10000)

    out2 = jax.block_until_ready(rotary_embeddings(x2, cos2, sin2))
    expected2 = rotary_embeddings_ref(x2, cos2, sin2)
    assert out2.shape == (b2, h2, s2, w2)
    assert jnp.allclose(out2, expected2, atol=1e-5, rtol=1e-5), "mismatch (long)"

    print("KERNEL_OK")
</pallas_src>

<mosaic_0001>
module attributes {stable_mosaic.version = 11 : i64} {
  func.func @_rope_kernel(%arg0: i32, %arg1: i32, %arg2: memref<8x8x32xf32, #tpu.memory_space<vmem>>, %arg3: memref<8x32xf32, #tpu.memory_space<vmem>>, %arg4: memref<8x32xf32, #tpu.memory_space<vmem>>, %arg5: memref<8x8x32xf32, #tpu.memory_space<vmem>>) attributes {dimension_semantics = [#tpu.dimension_semantics<parallel>, #tpu.dimension_semantics<parallel>], iteration_bounds = array<i64: 1, 1>, scalar_prefetch = 0 : i64, scratch_operands = 0 : i64, tpu.core_type = #tpu.core_type<tc>, window_params = [{transform_indices = @transform_0, window_bounds = array<i64: 8, 8, 32>}, {transform_indices = @transform_1, window_bounds = array<i64: 8, 32>}, {transform_indices = @transform_2, window_bounds = array<i64: 8, 32>}, {transform_indices = @transform_3, window_bounds = array<i64: 8, 8, 32>}]} {
    %c0 = arith.constant 0 : index
    %c0_0 = arith.constant 0 : index
    %c0_1 = arith.constant 0 : index
    %0 = vector.load %arg2[%c0, %c0_0, %c0_1] : memref<8x8x32xf32, #tpu.memory_space<vmem>>, vector<8x8x32xf32>
    %1 = vector.extract_strided_slice %0 {offsets = [0, 0, 16], sizes = [8, 8, 16], strides = [1, 1, 1]} : vector<8x8x32xf32> to vector<8x8x16xf32>
    %cst = arith.constant 0.000000e+00 : f32
    %2 = vector.broadcast %cst : f32 to vector<8x8x16xf32>
    %3 = arith.subf %2, %1 : vector<8x8x16xf32>
    %4 = vector.extract_strided_slice %0 {offsets = [0, 0, 0], sizes = [8, 8, 16], strides = [1, 1, 1]} : vector<8x8x32xf32> to vector<8x8x16xf32>
    %5 = tpu.concatenate %3, %4 in 2 : vector<8x8x16xf32>, vector<8x8x16xf32> -> vector<8x8x32xf32>
    %c0_2 = arith.constant 0 : index
    %c0_3 = arith.constant 0 : index
    %6 = vector.load %arg3[%c0_2, %c0_3] : memref<8x32xf32, #tpu.memory_space<vmem>>, vector<8x32xf32>
    %7 = vector.shape_cast %6 : vector<8x32xf32> to vector<1x8x32xf32>
    %8 = vector.broadcast %7 : vector<1x8x32xf32> to vector<8x8x32xf32>
    %9 = arith.mulf %8, %0 : vector<8x8x32xf32>
    %c0_4 = arith.constant 0 : index
    %c0_5 = arith.constant 0 : index
    %10 = vector.load %arg4[%c0_4, %c0_5] : memref<8x32xf32, #tpu.memory_space<vmem>>, vector<8x32xf32>
    %11 = vector.shape_cast %10 : vector<8x32xf32> to vector<1x8x32xf32>
    %12 = vector.broadcast %11 : vector<1x8x32xf32> to vector<8x8x32xf32>
    %13 = arith.mulf %12, %5 : vector<8x8x32xf32>
    %14 = arith.addf %9, %13 : vector<8x8x32xf32>
    %c0_6 = arith.constant 0 : index
    %c0_7 = arith.constant 0 : index
    %c0_8 = arith.constant 0 : index
    %15 = vector.load %arg5[%c0_6, %c0_7, %c0_8] : memref<8x8x32xf32, #tpu.memory_space<vmem>>, vector<8x8x32xf32>
    tpu.vector_store %arg5[%c0_6, %c0_7, %c0_8], %14 {strides = array<i32>} : memref<8x8x32xf32, #tpu.memory_space<vmem>>, vector<8x8x32xf32>,
    return
  }
  func.func @transform_0(%arg0: i32, %arg1: i32) -> (i32, i32, i32) {
    %c0_i32 = arith.constant 0 : i32
    %c0_i32_0 = arith.constant 0 : i32
    return %arg1, %arg0, %c0_i32 : i32, i32, i32
  }
  func.func @transform_1(%arg0: i32, %arg1: i32) -> (i32, i32) {
    %c0_i32 = arith.constant 0 : i32
    %c0_i32_0 = arith.constant 0 : i32
    return %arg0, %c0_i32 : i32, i32
  }
  func.func @transform_2(%arg0: i32, %arg1: i32) -> (i32, i32) {
    %c0_i32 = arith.constant 0 : i32
    %c0_i32_0 = arith.constant 0 : i32
    return %arg0, %c0_i32 : i32, i32
  }
  func.func @transform_3(%arg0: i32, %arg1: i32) -> (i32, i32, i32) {
    %c0_i32 = arith.constant 0 : i32
    %c0_i32_0 = arith.constant 0 : i32
    return %arg1, %arg0, %c0_i32 : i32, i32, i32
  }
}

</mosaic_0001>

<bundles_post_ra>
// kernel: tpu_custom_call.1
= control target key start
LH: loop header
LB: loop body
LE: loop exit
PB: predicated region body
PF: predicated region fallthrough
CT: control target
= control target key end

     0   :  { %8 = vsyncpa [#allocation3], 0  ;;  %s411_s0 = inlined_call_operand.hbm [shape: f32[8,8,32], index: 0, kind: input, shape index: {}]   ;;  %s412_s1 = inlined_call_operand.hbm [shape: f32[8,32], index: 1, kind: input, shape index: {}]   ;;  %s413_s2 = inlined_call_operand.hbm [shape: f32[8,32], index: 2, kind: input, shape index: {}]   ;;  %s414_s3 = inlined_call_operand.hbm [shape: f32[8,8,32], index: 3, kind: output, shape index: {}]  }
   0x1   :  { %9 = vsyncpa [#allocation6], 0 }
   0x2   :  { %10 = vsyncpa [#allocation4], 0  ;;  %s296_s12 = smov [#allocation5]   ;;  %s297_s14 = smov [#allocation2]  }
   0x3   :  { %s29_s13 = sshll.u32 %s296_s12, 4  ;;  %s16_s15 = sshll.u32 %s297_s14, 4  ;;  %s30_s13 = int_to_ptr.vmem [resolvable:$true] %s29_s13  ;;  %s324_s15 = int_to_ptr.vmem [resolvable:$true] %s16_s15 }
   0x4   :  { %s202_s18 = scalar_lea.hbm %s412_s1, 128 }
   0x5   :  { %p203_p0 = scmp.ne.s32.totalorder %s412_s1, %s202_s18  ;;  %p206_p1 = scmp.lt.u32.totalorder %s202_s18, %s412_s1 }
   0x7   :  { %p208_p2 = pnand %p206_p1, %p203_p0 }
   0x9   :  { %211 = shalt.err (!%p208_p2)
}
   0xa   :  { %s212_s23 = scalar_lea.vmem %s30_s13, 128  ;;  %p217_p4 = scmp.lt.s32.totalorder %s30_s13, %s30_s13 }
   0xb   :  { %p213_p3 = scmp.ne.s32.totalorder %s30_s13, %s212_s23  ;;  %p218_p5 = scmp.lt.s32.totalorder %s212_s23, %s212_s23 }
   0xd   :  { %p219_p6 = por %p218_p5, %p217_p4 }
   0xf   :  { %p220_p7 = pnand %p219_p6, %p213_p3 }
  0x11   :  { %223 = shalt.err (!%p220_p7)
}
  0x12   :  { %32 = dma.hbm_to_vmem [thread:$0]  %s412_s1, 128, %s30_s13, [#allocation6]  }
  0x13   :  { %s224_s28 = scalar_lea.hbm %s411_s0, 1024 }
  0x14   :  { %p225_p8 = scmp.ne.s32.totalorder %s411_s0, %s224_s28  ;;  %p228_p9 = scmp.lt.u32.totalorder %s224_s28, %s411_s0 }
  0x16   :  { %p230_p10 = pnand %p228_p9, %p225_p8 }
  0x18   :  { %233 = shalt.err (!%p230_p10)
}
  0x19   :  { %s234_s6 = scalar_lea.vmem %s324_s15, 1024  ;;  %p239_p12 = scmp.lt.s32.totalorder %s324_s15, %s324_s15 }
  0x1a   :  { %p235_p11 = scmp.ne.s32.totalorder %s324_s15, %s234_s6  ;;  %p240_p13 = scmp.lt.s32.totalorder %s234_s6, %s234_s6 }
  0x1c   :  { %p241_p0 = por %p240_p13, %p239_p12 }
  0x1e   :  { %p242_p1 = pnand %p241_p0, %p235_p11 }
  0x20   :  { %245 = shalt.err (!%p242_p1)
}
  0x21   :  { %s298_s1 = smov 128   ;;  %s299_s7 = smov 8  }
  0x22   :  { %22 = dma.hbm_to_vmem [thread:$0]  %s411_s0, 1024, %s324_s15, [#allocation3], %s298_s1, %s298_s1, %s299_s7  }
  0x23   :  { %s300_s10 = smov [#allocation7]   ;;  %s246_s14 = scalar_lea.hbm %s413_s2, 128 }
  0x24   :  { %s39_s11 = sshll.u32 %s300_s10, 4  ;;  %p247_p2 = scmp.ne.s32.totalorder %s413_s2, %s246_s14  ;;  %s40_s11 = int_to_ptr.vmem [resolvable:$true] %s39_s11 }
  0x25   :  { %p250_p3 = scmp.lt.u32.totalorder %s246_s14, %s413_s2 }
  0x27   :  { %p252_p4 = pnand %p250_p3, %p247_p2 }
  0x29   :  { %255 = shalt.err (!%p252_p4)
}
  0x2a   :  { %s256_s20 = scalar_lea.vmem %s40_s11, 128  ;;  %p261_p6 = scmp.lt.s32.totalorder %s40_s11, %s40_s11 }
  0x2b   :  { %p257_p5 = scmp.ne.s32.totalorder %s40_s11, %s256_s20  ;;  %p262_p7 = scmp.lt.s32.totalorder %s256_s20, %s256_s20 }
  0x2d   :  { %p263_p8 = por %p262_p7, %p261_p6 }
  0x2f   :  { %p264_p9 = pnand %p263_p8, %p257_p5 }
  0x31   :  { %267 = shalt.err (!%p264_p9)
}
  0x32   :  { %42 = dma.hbm_to_vmem [thread:$0]  %s413_s2, 128, %s40_s11, [#allocation6]  }
  0x33   :  { %290 = dma.done.wait [#allocation3], 1024  }
  0x34   :  { %291 = vsyncadd [#allocation3], 4294966272 }
  0x35   :  { %292 = dma.done.wait [#allocation6], 256  }
  0x36   :  { %293 = vsyncadd [#allocation6], 4294967040  ;;  %v54_v0 = vld [vmem:[#allocation2 + $0x10] sm:$0xff]  ;;  %v52_v1 = vld [vmem:[#allocation2] sm:$0xff]  ;;  %s301_s21 = smov 112   ;;  %s302_s2 = smov 16  }
  0x37   :  { %v62_v2 = vsub.f32 0.0, %v54_v0  ;;  %v60_v3 = vsub.f32 0.0, %v52_v1  ;;  %v55_v4 = vld [vmem:[#allocation2 + $0x18] sm:$0xff]  ;;  %v53_v5 = vld [vmem:[#allocation2 + $0x8] sm:$0xff]  ;;  %v56_v9 = vld [vmem:[#allocation2 + $0x20] sm:$0xff]  ;;  %vm132_vm0 = vcmask 130048  }
  0x38   :  { %v63_v6 = vsub.f32 0.0, %v55_v4  ;;  %v61_v7 = vsub.f32 0.0, %v53_v5  ;;  %v57_v8 = vld [vmem:[#allocation2 + $0x28] sm:$0xff]  ;;  %v64_v11 = vsub.f32 0.0, %v56_v9  ;;  %v370_v12 = vld [vmem:[#allocation2 + $0x38] sm:$0xff]  ;;  %v372_v13 = vld [vmem:[#allocation2 + $0x30] sm:$0xff] }
  0x39   :  { %80 = vrot.lane.b32.xlu1 %v62_v2, %s301_s21  ;;  %76 = vrot.lane.b32.xlu0 %v60_v3, %s301_s21  ;;  %v65_v10 = vsub.f32 0.0, %v57_v8  ;;  %v67_v14 = vsub.f32 0.0, %v370_v12  ;;  %v66_v15 = vsub.f32 0.0, %v372_v13  ;;  %v141_v24 = vld [vmem:[#allocation5] sm:$0xff]  ;;  %v150_v25 = vld [vmem:[#allocation7] sm:$0xff]  ;;  %vm167_vm1 = vcmask 261120  }
  0x3a   :  { %v142_v26 = vmul.f32 %v141_v24, %v52_v1  ;;  %v143_v28 = vmul.f32 %v141_v24, %v53_v5  ;;  %v144_v34 = vmul.f32 %v141_v24, %v54_v0  ;;  %v145_v37 = vmul.f32 %v141_v24, %v55_v4  ;;  %s303_s22 = smov [#allocation8]  }
  0x3b   :  { %v147_v46 = vmul.f32 %v141_v24, %v57_v8  ;;  %v146_v48 = vmul.f32 %v141_v24, %v56_v9  ;;  %v149_v56 = vmul.f32 %v141_v24, %v370_v12  ;;  %v148_v58 = vmul.f32 %v141_v24, %v372_v13  ;;  %s181_s23 = sshll.u32 %s303_s22, 4  ;;  %s182_s23 = int_to_ptr.vmem [resolvable:$true] %s181_s23 }
  0x3c   :  { %s268_s24 = scalar_lea.vmem %s182_s23, 1024  ;;  %p273_p11 = scmp.lt.s32.totalorder %s182_s23, %s182_s23 }
  0x3d   :  { %82 = vrot.lane.b32.xlu1 %v63_v6, %s301_s21  ;;  %78 = vrot.lane.b32.xlu0 %v61_v7, %s301_s21  ;;  %p269_p10 = scmp.ne.s32.totalorder %s182_s23, %s268_s24  ;;  %p274_p12 = scmp.lt.s32.totalorder %s268_s24, %s268_s24 }
  0x3f   :  { %p275_p13 = por %p274_p12, %p273_p11 }
  0x41   :  { %86 = vrot.lane.b32.xlu1 %v65_v10, %s301_s21  ;;  %84 = vrot.lane.b32.xlu0 %v64_v11, %s301_s21  ;;  %p276_p0 = pnand %p275_p13, %p269_p10 }
  0x45   :  { %90 = vrot.lane.b32.xlu1 %v67_v14, %s301_s21  ;;  %88 = vrot.lane.b32.xlu0 %v66_v15, %s301_s21 }
  0x49   :  { %110 = vrot.lane.b32.xlu1 %v53_v5, %s302_s2  ;;  %108 = vrot.lane.b32.xlu0 %v52_v1, %s302_s2 }
  0x4d   :  { %114 = vrot.lane.b32.xlu1 %v55_v4, %s302_s2  ;;  %112 = vrot.lane.b32.xlu0 %v54_v0, %s302_s2 }
  0x51   :  { %118 = vrot.lane.b32.xlu1 %v57_v8, %s302_s2  ;;  %116 = vrot.lane.b32.xlu0 %v56_v9, %s302_s2 }
  0x55   :  { %122 = vrot.lane.b32.xlu1 %v370_v12, %s302_s2  ;;  %120 = vrot.lane.b32.xlu0 %v372_v13, %s302_s2 }
  0xab   :  { %v81_v16 = vpop.permute.xlu1 %80  ;;  %v77_v17 = vpop.permute.xlu0 %76 }
  0xaf   :  { %v83_v18 = vpop.permute.xlu1 %82  ;;  %v79_v19 = vpop.permute.xlu0 %78 }
  0xb3   :  { %v87_v20 = vpop.permute.xlu1 %86  ;;  %v85_v21 = vpop.permute.xlu0 %84 }
  0xb7   :  { %v91_v22 = vpop.permute.xlu1 %90  ;;  %v89_v23 = vpop.permute.xlu0 %88 }
  0xbb   :  { %v111_v27 = vpop.permute.xlu1 %110  ;;  %v109_v29 = vpop.permute.xlu0 %108 }
  0xbc   :  { %v134_v30 = vsel %vm132_vm0, %v79_v19, %v111_v27  ;;  %v133_v31 = vsel %vm132_vm0, %v77_v17, %v109_v29 }
  0xbd   :  { %v152_v32 = vmul.f32 %v150_v25, %v134_v30  ;;  %v151_v33 = vmul.f32 %v150_v25, %v133_v31 }
  0xbf   :  { %v160_v35 = vadd.f32 %v152_v32, %v143_v28  ;;  %v159_v36 = vadd.f32 %v151_v33, %v142_v26  ;;  %v115_v38 = vpop.permute.xlu1 %114  ;;  %v113_v39 = vpop.permute.xlu0 %112 }
  0xc0   :  { %v136_v40 = vsel %vm132_vm0, %v83_v18, %v115_v38  ;;  %v135_v41 = vsel %vm132_vm0, %v81_v16, %v113_v39 }
  0xc1   :  { %169 = vst.msk [vmem:[#allocation8 + $0x8] sm:$0xff] %vm167_vm1, %v160_v35  ;;  %168 = vst.msk [vmem:[#allocation8] sm:$0xff] %vm167_vm1, %v159_v36  ;;  %v154_v42 = vmul.f32 %v150_v25, %v136_v40  ;;  %v153_v43 = vmul.f32 %v150_v25, %v135_v41 }
  0xc3   :  { %v162_v44 = vadd.f32 %v154_v42, %v145_v37  ;;  %v161_v45 = vadd.f32 %v153_v43, %v144_v34  ;;  %v119_v47 = vpop.permute.xlu1 %118  ;;  %v117_v49 = vpop.permute.xlu0 %116 }
  0xc4   :  { %v138_v50 = vsel %vm132_vm0, %v87_v20, %v119_v47  ;;  %v137_v51 = vsel %vm132_vm0, %v85_v21, %v117_v49 }
  0xc5   :  { %171 = vst.msk [vmem:[#allocation8 + $0x18] sm:$0xff] %vm167_vm1, %v162_v44  ;;  %170 = vst.msk [vmem:[#allocation8 + $0x10] sm:$0xff] %vm167_vm1, %v161_v45  ;;  %v156_v52 = vmul.f32 %v150_v25, %v138_v50  ;;  %v155_v53 = vmul.f32 %v150_v25, %v137_v51 }
  0xc7   :  { %v164_v54 = vadd.f32 %v156_v52, %v147_v46  ;;  %v163_v55 = vadd.f32 %v155_v53, %v146_v48  ;;  %v123_v57 = vpop.permute.xlu1 %122  ;;  %v121_v59 = vpop.permute.xlu0 %120 }
  0xc8   :  { %v140_v60 = vsel %vm132_vm0, %v91_v22, %v123_v57  ;;  %v139_v61 = vsel %vm132_vm0, %v89_v23, %v121_v59 }
  0xc9   :  { %173 = vst.msk [vmem:[#allocation8 + $0x28] sm:$0xff] %vm167_vm1, %v164_v54  ;;  %172 = vst.msk [vmem:[#allocation8 + $0x20] sm:$0xff] %vm167_vm1, %v163_v55  ;;  %v158_v62 = vmul.f32 %v150_v25, %v140_v60  ;;  %v157_v63 = vmul.f32 %v150_v25, %v139_v61 }
  0xcb   :  { %v166_v0 = vadd.f32 %v158_v62, %v149_v56  ;;  %v165_v1 = vadd.f32 %v157_v63, %v148_v58 }
  0xcd   :  { %175 = vst.msk [vmem:[#allocation8 + $0x38] sm:$0xff] %vm167_vm1, %v166_v0  ;;  %174 = vst.msk [vmem:[#allocation8 + $0x30] sm:$0xff] %vm167_vm1, %v165_v1 }
  0xce   :  { %279 = shalt.err (!%p276_p0)
}
  0xcf   :  { %s280_s27 = scalar_lea.hbm %s414_s3, 1024 }
  0xd0   :  { %p281_p1 = scmp.ne.s32.totalorder %s414_s3, %s280_s27  ;;  %p284_p2 = scmp.lt.u32.totalorder %s280_s27, %s414_s3 }
  0xd2   :  { %p286_p3 = pnand %p284_p2, %p281_p1 }
  0xd4   :  { %289 = shalt.err (!%p286_p3)
}
  0xd5   :  { %187 = dma.vmem_to_hbm [thread:$0]  %s182_s23, 1024, %s414_s3, [#allocation4], %s298_s1, %s298_s1, %s299_s7  }
  0xd6   :  { %294 = dma.done.wait [#allocation4], 1024  }
  0xd7   :  { %295 = vsyncadd [#allocation4], 4294966272 }
  0xd8   :  { %191 = vsyncpa [#allocation3], 1 }
  0xd9   :  { %192 = vsyncpa [#allocation6], 1 }
  0xda   :  { %193 = vsyncpa [#allocation4], 1 }

</bundles_post_ra>
